<compile_context>
chip_gen: v6e
topology: v6e:2x2x1
jax: 0.10.0
libtpu: 0.0.40
codegen_flags: <defaults>
</compile_context>

<pallas_src>
import functools

import jax
import jax.numpy as jnp
from jax import lax
from jax.experimental import pallas as pl
from jax.experimental.pallas import tpu as pltpu

EPS = 1e-5
_TARGET_BLOCK_BYTES = 4 * 1024 * 1024   # ~4 MiB input blocks
_VMEM_CAP_BYTES = 48 << 20              # never ask the compiler for more than this
_VMEM_FLOOR_BYTES = 32 << 20            # leave room for compiler-internal scratch


def _vmem_budget_bytes():
    """Scratch budget derived from physical VMEM (v5e/v6e 128 MiB, v7x 64 MiB)."""
    try:
        phys = int(pltpu.get_tpu_info().vmem_capacity_bytes)
    except Exception:
        phys = 64 << 20                 # assume the smallest (v7x) if unknown
    return int(min(_VMEM_CAP_BYTES, (phys * 3) // 4))


def _plan(rows, hw, itemsize, budget):
    """Pick (row_tile, buffer_count, required_live_vmem_bytes)."""
    # sublane packing: 8 rows/vreg for 4-byte dtypes, 16 for 2-byte, 32 for 1-byte
    sub = max(8, 32 // max(int(itemsize), 1))
    row_io = hw * itemsize                            # one row of input (== output)
    row_f32 = hw * 4
    live_db = 2 * (row_io + row_io) + 3 * row_f32     # double-buffered in+out + f32 temps
    live_sb = (row_io + row_io) + 3 * row_f32         # single-buffered fallback

    if rows < 2 * sub:
        tile = rows                                   # full first dim: always legal
    else:
        # largest sublane-aligned tile <= target bytes, but never more than half
        # the rows -> grid >= 2 balanced steps (keeps both v7x TCs busy).
        tile = max(sub, min(_TARGET_BLOCK_BYTES // max(row_io, 1), rows // 2) // sub * sub)

    buffers = 2
    if tile * live_db > budget:                       # VMEM guard (matters on v7x)
        shrunk = (budget // live_db) // sub * sub
        if sub <= shrunk < tile:
            tile = shrunk
        if tile * live_db > budget:
            buffers = 1                               # single-buffer the in/out specs
            if tile > sub and rows >= sub and tile * live_sb > budget:
                tile = sub
        # TODO(synk): if even a single (sub, hw) block overflows VMEM (hw in the
        # multi-hundred-thousands), a second "arbitrary" hw grid axis with a
        # partial-sum scratch would be needed; not implemented.

    required = tile * (live_db if buffers == 2 else live_sb)
    return tile, buffers, required


def _style_rand_kernel(x_ref, o_ref, *, eps, hw):
    # x_ref: (row_tile, H*W) block in VMEM; rows on sublanes, spatial on lanes.
    x = x_ref[...].astype(jnp.float32)

    mean = jnp.sum(x, axis=-1, keepdims=True) * jnp.float32(1.0 / hw)
    centered = x - mean                                # reused for the normalize below
    # Two-pass, cancellation-free unbiased variance (torch.var default, ddof=1).
    var = jnp.sum(centered * centered, axis=-1, keepdims=True) * jnp.float32(
        1.0 / max(hw - 1, 1))
    var = jnp.maximum(var, 0.0)

    # Fold normalize + clamp(-1,1) + "/2 + 0.5" into one affine + clip(0,1):
    #   clip((x-mean)*r, -1, 1)/2 + 0.5 == clip(centered*(0.5*r) + 0.5, 0, 1)
    r = lax.rsqrt(var + jnp.float32(eps))              # rides the EUP slot
    y = jnp.clip(centered * (r * jnp.float32(0.5)) + jnp.float32(0.5), 0.0, 1.0)
    y = jnp.where(y <= 0.0, jnp.float32(1e-6), y)

    o_ref[...] = y.astype(o_ref.dtype)


def style_randomization(x, *, eps=EPS, training=True):
    """JAX/Pallas equivalent of StyleRandomization.forward(x, device)."""
    if not training:
        return x

    N, C, H, W = x.shape
    hw = H * W
    rows = N * C
    itemsize = jnp.dtype(x.dtype).itemsize

    x2d = x.reshape(rows, hw)                          # free view of contiguous NCHW data

    budget = _vmem_budget_bytes()
    tile, buffers, required = _plan(rows, hw, itemsize, budget)
    grid = (pl.cdiv(rows, tile),)                      # ragged last block masked by Pallas

    vmem_limit = int(max(_VMEM_FLOOR_BYTES, min(budget, required + (2 << 20))))
    if vmem_limit < required + (1 << 20):
        vmem_limit = int(required + (2 << 20))         # exotic huge-hw case; best effort

    if buffers == 2:
        in_spec = pl.BlockSpec((tile, hw), lambda i: (i, 0))
        out_spec = pl.BlockSpec((tile, hw), lambda i: (i, 0))
    else:
        in_spec = pl.BlockSpec((tile, hw), lambda i: (i, 0), pipeline_mode=pl.Buffered(1))
        out_spec = pl.BlockSpec((tile, hw), lambda i: (i, 0), pipeline_mode=pl.Buffered(1))

    kernel = functools.partial(_style_rand_kernel, eps=eps, hw=hw)

    out2d = pl.pallas_call(
        kernel,
        out_shape=jax.ShapeDtypeStruct((rows, hw), x.dtype),
        grid_spec=pltpu.PrefetchScalarGridSpec(
            num_scalar_prefetch=0,
            grid=grid,
            in_specs=[in_spec],
            out_specs=out_spec,
        ),
        compiler_params=pltpu.CompilerParams(
            dimension_semantics=("parallel",),         # shards grid steps across TCs
            vmem_limit_bytes=vmem_limit),
        cost_estimate=pl.CostEstimate(
            flops=10 * rows * hw,
            transcendentals=rows,
            bytes_accessed=2 * rows * hw * itemsize),
    )(x2d)

    return out2d.reshape(N, C, H, W)


def _reference(x, eps=EPS):
    # pure-JAX reference of the (effective) PyTorch forward in training mode
    N, C, H, W = x.shape
    xf = x.reshape(N, C, -1).astype(jnp.float32)
    mean = jnp.mean(xf, axis=-1, keepdims=True)
    var = jnp.var(xf, axis=-1, keepdims=True, ddof=1)
    xn = (xf - mean) / jnp.sqrt(var + eps)
    xn = xn.reshape(N, C, H, W)
    xn = jnp.clip(xn, -1.0, 1.0)
    xn = xn / 2.0 + 0.5
    xn = jnp.where(xn <= 0.0, 1e-6, xn)
    return xn.astype(x.dtype)


if __name__ == "__main__":
    # Primary small shape consistent with the module.
    key = jax.random.PRNGKey(0)
    N, C, H, W = 2, 4, 16, 16
    x = jax.random.normal(key, (N, C, H, W), dtype=jnp.float32)

    out = jax.block_until_ready(style_randomization(x, training=True))
    ref = _reference(x)
    assert out.shape == (N, C, H, W)
    assert jnp.allclose(out, ref, atol=1e-5, rtol=1e-5), "mismatch vs reference (aligned)"

    # Also exercise a multi-step grid and a non-128-aligned spatial map (14x14).
    x2 = jax.random.normal(jax.random.PRNGKey(1), (2, 64, 14, 14), dtype=jnp.float32)
    out2 = jax.block_until_ready(style_randomization(x2, training=True))
    assert jnp.allclose(out2, _reference(x2), atol=1e-5, rtol=1e-5), "mismatch (14x14)"

    print("KERNEL_OK")
</pallas_src>

<mosaic_0001>
module attributes {stable_mosaic.version = 11 : i64} {
  func.func @_style_rand_kernel(%arg0: i32, %arg1: memref<8x256xf32, #tpu.memory_space<vmem>>, %arg2: memref<8x256xf32, #tpu.memory_space<vmem>>) attributes {dimension_semantics = [#tpu.dimension_semantics<parallel>], iteration_bounds = array<i64: 1>, scalar_prefetch = 0 : i64, scratch_operands = 0 : i64, tpu.core_type = #tpu.core_type<tc>, window_params = [{transform_indices = @transform_0, window_bounds = array<i64: 8, 256>}, {transform_indices = @transform_1, window_bounds = array<i64: 8, 256>}]} {
    %c0 = arith.constant 0 : index
    %c0_0 = arith.constant 0 : index
    %0 = vector.load %arg1[%c0, %c0_0] : memref<8x256xf32, #tpu.memory_space<vmem>>, vector<8x256xf32>
    %cst = arith.constant dense<0.000000e+00> : vector<8xf32>
    %1 = vector.multi_reduction <add>, %0, %cst [1] : vector<8x256xf32> to vector<8xf32>
    %2 = vector.shape_cast %1 : vector<8xf32> to vector<8x1xf32>
    %cst_1 = arith.constant 3.906250e-03 : f32
    %3 = vector.broadcast %cst_1 : f32 to vector<8x1xf32>
    %4 = arith.mulf %2, %3 : vector<8x1xf32>
    %5 = vector.broadcast %4 : vector<8x1xf32> to vector<8x256xf32>
    %6 = arith.subf %0, %5 : vector<8x256xf32>
    %7 = arith.mulf %6, %6 : vector<8x256xf32>
    %cst_2 = arith.constant dense<0.000000e+00> : vector<8xf32>
    %8 = vector.multi_reduction <add>, %7, %cst_2 [1] : vector<8x256xf32> to vector<8xf32>
    %9 = vector.shape_cast %8 : vector<8xf32> to vector<8x1xf32>
    %cst_3 = arith.constant 0.00392156886 : f32
    %10 = vector.broadcast %cst_3 : f32 to vector<8x1xf32>
    %11 = arith.mulf %9, %10 : vector<8x1xf32>
    %cst_4 = arith.constant 0.000000e+00 : f32
    %12 = vector.broadcast %cst_4 : f32 to vector<8x1xf32>
    %13 = arith.maximumf %11, %12 : vector<8x1xf32>
    %cst_5 = arith.constant 9.99999974E-6 : f32
    %14 = vector.broadcast %cst_5 : f32 to vector<8x1xf32>
    %15 = arith.addf %13, %14 : vector<8x1xf32>
    %16 = math.rsqrt %15 : vector<8x1xf32>
    %cst_6 = arith.constant 5.000000e-01 : f32
    %17 = vector.broadcast %cst_6 : f32 to vector<8x1xf32>
    %18 = arith.mulf %16, %17 : vector<8x1xf32>
    %19 = vector.broadcast %18 : vector<8x1xf32> to vector<8x256xf32>
    %20 = arith.mulf %6, %19 : vector<8x256xf32>
    %cst_7 = arith.constant 5.000000e-01 : f32
    %21 = vector.broadcast %cst_7 : f32 to vector<8x256xf32>
    %22 = arith.addf %20, %21 : vector<8x256xf32>
    %cst_8 = arith.constant 0.000000e+00 : f32
    %cst_9 = arith.constant 1.000000e+00 : f32
    %23 = vector.broadcast %cst_8 : f32 to vector<8x256xf32>
    %24 = arith.maximumf %23, %22 : vector<8x256xf32>
    %25 = vector.broadcast %cst_9 : f32 to vector<8x256xf32>
    %26 = arith.minimumf %25, %24 : vector<8x256xf32>
    %cst_10 = arith.constant 0.000000e+00 : f32
    %27 = vector.broadcast %cst_10 : f32 to vector<8x256xf32>
    %28 = arith.cmpf ole, %26, %27 : vector<8x256xf32>
    %cst_11 = arith.constant 9.99999997E-7 : f32
    %29 = vector.broadcast %cst_11 : f32 to vector<8x256xf32>
    %30 = arith.select %28, %29, %26 : vector<8x256xi1>, vector<8x256xf32>
    %c0_12 = arith.constant 0 : index
    %c0_13 = arith.constant 0 : index
    %31 = vector.load %arg2[%c0_12, %c0_13] : memref<8x256xf32, #tpu.memory_space<vmem>>, vector<8x256xf32>
    tpu.vector_store %arg2[%c0_12, %c0_13], %30 {strides = array<i32>} : memref<8x256xf32, #tpu.memory_space<vmem>>, vector<8x256xf32>,
    return
  }
  func.func @transform_0(%arg0: i32) -> (i32, i32) {
    %c0_i32 = arith.constant 0 : i32
    %c0_i32_0 = arith.constant 0 : i32
    return %arg0, %c0_i32 : i32, i32
  }
  func.func @transform_1(%arg0: i32) -> (i32, i32) {
    %c0_i32 = arith.constant 0 : i32
    %c0_i32_0 = arith.constant 0 : i32
    return %arg0, %c0_i32 : i32, i32
  }
}

</mosaic_0001>

<bundles_post_ra>
// kernel: tpu_custom_call.1
= control target key start
LH: loop header
LB: loop body
LE: loop exit
PB: predicated region body
PF: predicated region fallthrough
CT: control target
= control target key end

     0   :  { %6 = vsyncpa [#allocation3], 0  ;;  %s134_s0 = inlined_call_operand.hbm [shape: f32[8,256], index: 0, kind: input, shape index: {}]   ;;  %s135_s1 = inlined_call_operand.hbm [shape: f32[8,256], index: 1, kind: output, shape index: {}]  }
   0x1   :  { %7 = vsyncpa [#allocation4], 0  ;;  %s116_s6 = smov [#allocation2]  }
   0x2   :  { %s14_s7 = sshll.u32 %s116_s6, 4  ;;  %s15_s7 = int_to_ptr.vmem [resolvable:$true] %s14_s7 }
   0x3   :  { %s80_s8 = scalar_lea.vmem %s15_s7, 256  ;;  %p85_p1 = scmp.lt.s32.totalorder %s15_s7, %s15_s7 }
   0x4   :  { %p81_p0 = scmp.ne.s32.totalorder %s15_s7, %s80_s8  ;;  %p86_p2 = scmp.lt.s32.totalorder %s80_s8, %s80_s8 }
   0x6   :  { %p87_p3 = por %p86_p2, %p85_p1 }
   0x8   :  { %p88_p4 = pnand %p87_p3, %p81_p0 }
   0xa   :  { %91 = shalt.err (!%p88_p4)
}
   0xb   :  { %17 = dma.hbm_to_vmem [thread:$0]  %s134_s0, 256, %s15_s7, [#allocation3]  }
   0xc   :  { %112 = dma.done.wait [#allocation3], 256  }
   0xd   :  { %113 = vsyncadd [#allocation3], 4294967040  ;;  %v21_v0 = vld [vmem:[#allocation2] sm:$0xff]  ;;  %v22_v1 = vld [vmem:[#allocation2 + $0x8] sm:$0xff]  ;;  %s117_s0 = smov [#allocation5]  }
   0xe   :  { %v23_v2 = vadd.f32 %v22_v1, %v21_v0  ;;  %s59_s11 = sshll.u32 %s117_s0, 4  ;;  %s60_s11 = int_to_ptr.vmem [resolvable:$true] %s59_s11 }
   0xf   :  { %s92_s12 = scalar_lea.vmem %s60_s11, 256  ;;  %p97_p6 = scmp.lt.s32.totalorder %s60_s11, %s60_s11 }
  0x10   :  { %24 = vadd.xlane.f32.xlu0 %v23_v2  ;;  %p93_p5 = scmp.ne.s32.totalorder %s60_s11, %s92_s12  ;;  %p98_p7 = scmp.lt.s32.totalorder %s92_s12, %s92_s12 }
  0x12   :  { %p99_p8 = por %p98_p7, %p97_p6 }
  0x14   :  { %p100_p9 = pnand %p99_p8, %p93_p5 }
  0x99   :  { %v25_v3 = vpop.xlane.xlu0 %24 }
  0x9a   :  { %v26_v4 = vmul.f32 0.00390625, %v25_v3 }
  0x9c   :  { %v27_v5 = vsub.f32 %v21_v0, %v26_v4  ;;  %v28_v6 = vsub.f32 %v22_v1, %v26_v4 }
  0x9e   :  { %v29_v7 = vmul.f32 %v27_v5, %v27_v5  ;;  %v30_v8 = vmul.f32 %v28_v6, %v28_v6 }
  0xa0   :  { %v31_v9 = vadd.f32 %v30_v8, %v29_v7 }
  0xa2   :  { %32 = vadd.xlane.f32.xlu0 %v31_v9 }
 0x12b   :  { %v33_v10 = vpop.xlane.xlu0 %32 }
 0x12c   :  { %v34_v11 = vmul.f32 0.003921569, %v33_v10 }
 0x12e   :  { %v35_v12 = vmax.f32 %v34_v11, 0.0 }
 0x130   :  { %v36_v13 = vadd.f32 1e-05, %v35_v12 }
 0x132   :  { %70 = vrsqrt.f32 %v36_v13 }
 0x13f   :  { %v71_v14 = vpop.eup %70 }
 0x140   :  { %v38_v15 = vmul.f32 0.5, %v71_v14 }
 0x142   :  { %v39_v16 = vmul.f32 %v38_v15, %v27_v5  ;;  %v40_v17 = vmul.f32 %v38_v15, %v28_v6 }
 0x144   :  { %v41_v18 = vadd.f32 0.5, %v39_v16  ;;  %v42_v19 = vadd.f32 0.5, %v40_v17 }
 0x146   :  { %v43_v20 = vmax.f32 %v41_v18, 0.0  ;;  %v44_v21 = vmax.f32 %v42_v19, 0.0 }
 0x148   :  { %v45_v22 = vmin.f32 %v43_v20, 1.0  ;;  %v46_v23 = vmin.f32 %v44_v21, 1.0 }
 0x14a   :  { %vm47_vm0 = vcmp.le.f32.partialorder %v45_v22, 0.0  ;;  %vm48_vm1 = vcmp.le.f32.partialorder %v46_v23, 0.0 }
 0x14b   :  { %v49_v24 = vsel %vm47_vm0, 1e-06, %v45_v22  ;;  %v50_v25 = vsel %vm48_vm1, 1e-06, %v46_v23 }
 0x14c   :  { %51 = vst [vmem:[#allocation5] sm:$0xff] %v49_v24  ;;  %52 = vst [vmem:[#allocation5 + $0x8] sm:$0xff] %v50_v25 }
 0x14d   :  { %103 = shalt.err (!%p100_p9)
}
 0x14e   :  { %62 = dma.vmem_to_hbm [thread:$0]  %s60_s11, 256, %s135_s1, [#allocation4]  }
 0x14f   :  { %114 = dma.done.wait [#allocation4], 256  }
 0x150   :  { %115 = vsyncadd [#allocation4], 4294967040 }
 0x151   :  { %66 = vsyncpa [#allocation3], 1 }
 0x152   :  { %67 = vsyncpa [#allocation4], 1 }

</bundles_post_ra>
